<compile_context>
chip_gen: v6e
topology: v6e:2x2x1
jax: 0.10.0
libtpu: 0.0.40
codegen_flags: <defaults>
</compile_context>

<pallas_src>
import jax
import jax.numpy as jnp
from jax.experimental import pallas as pl
from jax.experimental.pallas import tpu as pltpu

_TARGET_BLOCK_BYTES = 2 * 1024 * 1024          # ~2 MiB per block
_LANE_CANDIDATES = (1024, 512, 256, 128)       # lane widths (multiples of 128)


def _sigmoid_density_kernel(alpha_ref, sdf_ref, out_ref):
    # alpha_ref: scalar-prefetch SMEM ref holding alpha = 1/beta (1 element, f32)
    alpha = alpha_ref[0]
    s = sdf_ref[...].astype(jnp.float32)
    # alpha * sigmoid(-s * alpha) = alpha / (1 + exp(s * alpha)).
    # exp overflow -> inf -> result 0, which matches sigmoid's saturation.
    z = jnp.exp(s * alpha)
    out_ref[...] = (alpha * pl.reciprocal(1.0 + z, approx=False)).astype(out_ref.dtype)


def sigmoid_density(sdf, beta_param, beta_min_param, beta=None):
    """Pallas equivalent of SigmoidDensity.forward.

    sdf: float array of any shape.
    beta_param, beta_min_param: shape-(1,) parameters (learnable / fixed).
    beta: optional scalar override (like the PyTorch arg).
    """
    orig_shape = sdf.shape
    orig_dtype = sdf.dtype

    # get_beta(): |beta| + beta_min (tiny scalar math stays in JAX)
    if beta is None:
        beta_eff = jnp.abs(beta_param.astype(jnp.float32)) + beta_min_param.astype(jnp.float32)
    else:
        # TODO(synk): per-element beta override tensors are not supported; scalar beta only.
        beta_eff = jnp.asarray(beta, jnp.float32).reshape(-1)[:1]
    alpha = (1.0 / beta_eff.reshape(-1)[:1]).astype(jnp.float32)   # shape (1,)

    # Flatten to a lane-dense 2-D slab, streaming in the caller's dtype.
    flat = sdf.reshape(-1)
    total = int(flat.shape[0])

    # Widest lane width that divides the element count -> copy-free reshape.
    lane = next((l for l in _LANE_CANDIDATES if total % l == 0), 128)
    padded = pl.cdiv(total, lane) * lane
    if padded != total:
        flat = jnp.pad(flat, (0, padded - total))   # at most one lane-row of padding
    rows = padded // lane
    x2d = flat.reshape(rows, lane)

    # Block rows: ~2 MiB blocks (multiple of 8), or the whole array if it's small.
    elem_bytes = jnp.dtype(x2d.dtype).itemsize
    budget_rows = max(8, (_TARGET_BLOCK_BYTES // (lane * elem_bytes)) // 8 * 8)
    block_rows = rows if rows <= budget_rows else budget_rows
    grid = (pl.cdiv(rows, block_rows),)

    out2d = pl.pallas_call(
        _sigmoid_density_kernel,
        out_shape=jax.ShapeDtypeStruct((rows, lane), orig_dtype),
        grid_spec=pltpu.PrefetchScalarGridSpec(
            num_scalar_prefetch=1,   # alpha lands in SMEM
            grid=grid,
            in_specs=[pl.BlockSpec((block_rows, lane), lambda i, a: (i, 0))],
            out_specs=pl.BlockSpec((block_rows, lane), lambda i, a: (i, 0)),
        ),
        compiler_params=pltpu.CompilerParams(
            dimension_semantics=("parallel",)),
    )(alpha, x2d)

    out = out2d.reshape(-1)
    if padded != total:
        out = out[:total]
    return out.reshape(orig_shape)


if __name__ == "__main__":
    key = jax.random.PRNGKey(0)

    # Deterministic parameter init matching __init__ shapes:
    init_val = 0.1
    beta_min = 1e-4
    beta_param = init_val * jnp.ones((1,), jnp.float32)      # learnable beta
    beta_min_param = beta_min * jnp.ones((1,), jnp.float32)  # fixed beta_min

    k1, k2 = jax.random.split(key)

    # Small sdf input consistent with the module ('bs', ...): [bs, rays, samples]
    sdf = jax.random.normal(k1, (2, 128, 8), dtype=jnp.float32)
    out = jax.block_until_ready(sigmoid_density(sdf, beta_param, beta_min_param))

    beta_ref = jnp.abs(beta_param) + beta_min_param
    alpha_ref = 1.0 / beta_ref
    expected = alpha_ref * jax.nn.sigmoid(-sdf * alpha_ref)
    assert out.shape == sdf.shape and out.dtype == sdf.dtype
    assert jnp.allclose(out, expected, rtol=1e-4, atol=1e-4)

    # Ragged / odd-shaped case exercises the single-tile pad path.
    sdf2 = jax.random.normal(k2, (3, 7, 5), dtype=jnp.float32)
    out2 = jax.block_until_ready(sigmoid_density(sdf2, beta_param, beta_min_param))
    expected2 = alpha_ref * jax.nn.sigmoid(-sdf2 * alpha_ref)
    assert out2.shape == sdf2.shape
    assert jnp.allclose(out2, expected2, rtol=1e-4, atol=1e-4)

    print("KERNEL_OK")
</pallas_src>

<mosaic_0001>
module attributes {stable_mosaic.version = 11 : i64} {
  func.func @_sigmoid_density_kernel(%arg0: i32, %arg1: memref<1xf32, #tpu.memory_space<smem>>, %arg2: memref<2x1024xf32, #tpu.memory_space<vmem>>, %arg3: memref<2x1024xf32, #tpu.memory_space<vmem>>) attributes {dimension_semantics = [#tpu.dimension_semantics<parallel>], iteration_bounds = array<i64: 1>, scalar_prefetch = 1 : i64, scratch_operands = 0 : i64, tpu.core_type = #tpu.core_type<tc>, window_params = [{transform_indices = @transform_0, window_bounds = array<i64: 2, 1024>}, {transform_indices = @transform_1, window_bounds = array<i64: 2, 1024>}]} {
    %c0 = arith.constant 0 : index
    %0 = memref.load %arg1[%c0] : memref<1xf32, #tpu.memory_space<smem>>
    %c0_0 = arith.constant 0 : index
    %c0_1 = arith.constant 0 : index
    %1 = vector.load %arg2[%c0_0, %c0_1] : memref<2x1024xf32, #tpu.memory_space<vmem>>, vector<2x1024xf32>
    %2 = vector.broadcast %0 : f32 to vector<2x1024xf32>
    %3 = arith.mulf %1, %2 : vector<2x1024xf32>
    %4 = math.exp %3 : vector<2x1024xf32>
    %cst = arith.constant 1.000000e+00 : f32
    %5 = vector.broadcast %cst : f32 to vector<2x1024xf32>
    %6 = arith.addf %5, %4 : vector<2x1024xf32>
    %7 = tpu.reciprocal %6 : vector<2x1024xf32> -> vector<2x1024xf32>
    %8 = vector.broadcast %0 : f32 to vector<2x1024xf32>
    %9 = arith.mulf %8, %7 : vector<2x1024xf32>
    %c0_2 = arith.constant 0 : index
    %c0_3 = arith.constant 0 : index
    %10 = vector.load %arg3[%c0_2, %c0_3] : memref<2x1024xf32, #tpu.memory_space<vmem>>, vector<2x1024xf32>
    tpu.vector_store %arg3[%c0_2, %c0_3], %9 {strides = array<i32>} : memref<2x1024xf32, #tpu.memory_space<vmem>>, vector<2x1024xf32>,
    return
  }
  func.func @transform_0(%arg0: i32, %arg1: memref<1xf32, #tpu.memory_space<smem>>) -> (i32, i32) {
    %c0_i32 = arith.constant 0 : i32
    %c0_i32_0 = arith.constant 0 : i32
    return %arg0, %c0_i32 : i32, i32
  }
  func.func @transform_1(%arg0: i32, %arg1: memref<1xf32, #tpu.memory_space<smem>>) -> (i32, i32) {
    %c0_i32 = arith.constant 0 : i32
    %c0_i32_0 = arith.constant 0 : i32
    return %arg0, %c0_i32 : i32, i32
  }
}

</mosaic_0001>

<bundles_post_ra>
// kernel: tpu_custom_call.1
= control target key start
LH: loop header
LB: loop body
LE: loop exit
PB: predicated region body
PF: predicated region fallthrough
CT: control target
= control target key end

     0   :  { %8 = vsyncpa [#allocation5], 0  ;;  %s136_s0 = inlined_call_operand.<no memory space> [shape: f32[1], index: 0, kind: input, shape index: {}]   ;;  %s137_s1 = inlined_call_operand.hbm [shape: f32[2,1024], index: 1, kind: input, shape index: {}]   ;;  %s138_s2 = inlined_call_operand.hbm [shape: f32[2,1024], index: 2, kind: output, shape index: {}]  }
   0x1   :  { %9 = vsyncpa [#allocation6], 0  ;;  %s110_s9 = smov [#allocation4]  }
   0x2   :  { %s16_s10 = sshll.u32 %s110_s9, 4  ;;  %s17_s10 = int_to_ptr.vmem [resolvable:$true] %s16_s10 }
   0x3   :  { %s74_s11 = scalar_lea.vmem %s17_s10, 256  ;;  %p79_p1 = scmp.lt.s32.totalorder %s17_s10, %s17_s10 }
   0x4   :  { %p75_p0 = scmp.ne.s32.totalorder %s17_s10, %s74_s11  ;;  %p80_p2 = scmp.lt.s32.totalorder %s74_s11, %s74_s11 }
   0x6   :  { %p81_p3 = por %p80_p2, %p79_p1 }
   0x8   :  { %p82_p4 = pnand %p81_p3, %p75_p0 }
   0xa   :  { %85 = shalt.err (!%p82_p4)
}
   0xb   :  { %19 = dma.hbm_to_vmem [thread:$0]  %s137_s1, 256, %s17_s10, [#allocation5]  }
   0xc   :  { %106 = dma.done.wait [#allocation5], 256  }
   0xd   :  { %107 = vsyncadd [#allocation5], 4294967040  ;;  %v26_v0 = vstv %s136_s0  ;;  %v24_v1 = vld [vmem:[#allocation4] sm:$0xff]  ;;  %v25_v2 = vld [vmem:[#allocation4 + $0x8] sm:$0xff]  ;;  %s111_s1 = smov [#allocation7]  }
   0xe   :  { %v27_v3 = vmul.f32 %v26_v0, %v24_v1  ;;  %v28_v4 = vmul.f32 %v26_v0, %v25_v2  ;;  %s47_s16 = sshll.u32 %s111_s1, 4  ;;  %s48_s16 = int_to_ptr.vmem [resolvable:$true] %s47_s16 }
   0xf   :  { %s86_s0 = scalar_lea.vmem %s48_s16, 256  ;;  %p91_p6 = scmp.lt.s32.totalorder %s48_s16, %s48_s16 }
  0x10   :  { %v29_v5 = vmul.f32 1.442695, %v27_v3  ;;  %v31_v6 = vmul.f32 1.442695, %v28_v4  ;;  %p87_p5 = scmp.ne.s32.totalorder %s48_s16, %s86_s0  ;;  %p92_p7 = scmp.lt.s32.totalorder %s86_s0, %s86_s0 }
  0x12   :  { %58 = vpow2.f32 %v29_v5  ;;  %p93_p8 = por %p92_p7, %p91_p6 }
  0x13   :  { %60 = vpow2.f32 %v31_v6 }
  0x14   :  { %p94_p9 = pnand %p93_p8, %p87_p5 }
  0x1f   :  { %v59_v7 = vpop.eup %58 }
  0x20   :  { %v61_v8 = vpop.eup %60  ;;  %v33_v9 = vadd.f32 1.0, %v59_v7 }
  0x21   :  { %v34_v10 = vadd.f32 1.0, %v61_v8 }
  0x22   :  { %62 = vrcp.f32 %v33_v9 }
  0x23   :  { %64 = vrcp.f32 %v34_v10 }
  0x2f   :  { %v63_v11 = vpop.eup %62 }
  0x30   :  { %v65_v12 = vpop.eup %64  ;;  %v37_v13 = vmul.f32 %v63_v11, %v26_v0 }
  0x31   :  { %v38_v14 = vmul.f32 %v65_v12, %v26_v0 }
  0x32   :  { %39 = vst [vmem:[#allocation7] sm:$0xff] %v37_v13 }
  0x33   :  { %40 = vst [vmem:[#allocation7 + $0x8] sm:$0xff] %v38_v14 }
  0x34   :  { %97 = shalt.err (!%p94_p9)
}
  0x35   :  { %50 = dma.vmem_to_hbm [thread:$0]  %s48_s16, 256, %s138_s2, [#allocation6]  }
  0x36   :  { %108 = dma.done.wait [#allocation6], 256  }
  0x37   :  { %109 = vsyncadd [#allocation6], 4294967040 }
  0x38   :  { %54 = vsyncpa [#allocation5], 1 }
  0x39   :  { %55 = vsyncpa [#allocation6], 1 }

</bundles_post_ra>
